<compile_context>
chip_gen: v6e
topology: v6e:2x2x1
jax: 0.10.0
libtpu: 0.0.40
codegen_flags: <defaults>
</compile_context>

<pallas_src>
import jax
import jax.numpy as jnp
from jax.experimental import pallas as pl
from jax.experimental.pallas import tpu as pltpu

_SUBLANE = 8
_LANE = 128


def _round_up(x, m):
    return ((x + m - 1) // m) * m


# ----------------------------------------------------------------------------
# Parameter construction (deterministic, synthetic)
# ----------------------------------------------------------------------------
def _init_linear(key, fan_in, fan_out):
    kw, kb = jax.random.split(key)
    scale = 1.0 / jnp.sqrt(jnp.float32(fan_in))
    w = jax.random.uniform(kw, (fan_in, fan_out), jnp.float32, -scale, scale)
    b = jax.random.uniform(kb, (1, fan_out), jnp.float32, -scale, scale)
    return w, b


def init_supcvae_params(key, in_channels, cfg):
    emb_chnls = cfg["emb_layers_out_chnls"]
    aux_chnls = cfg["aux_struct_enc_layers_out_chnls"]
    add_chnls = cfg["vae_enc_add_chnls"]
    latent = cfg["vae_latent_dim"]

    keys = iter(jax.random.split(key, 64))
    p = {}

    # embedder: stack of linears, outputs concatenated later
    layers, prev = [], in_channels
    for c in emb_chnls:
        layers.append(_init_linear(next(keys), prev, c))
        prev = c
    p["emb_layers"] = layers

    # emb additional channels + final
    layers, prev = [], sum(emb_chnls)
    for c in add_chnls:
        layers.append(_init_linear(next(keys), prev, c))
        prev = c
    p["emb_add"] = layers
    p["emb_final"] = _init_linear(next(keys), prev, 2 * latent)

    # aux struct encoder (takes first 3 input channels)
    layers, prev = [], 3
    for c in aux_chnls:
        layers.append(_init_linear(next(keys), prev, c))
        prev = c
    p["aux_layers"] = layers

    layers, prev = [], aux_chnls[-1]
    for c in add_chnls:
        layers.append(_init_linear(next(keys), prev, c))
        prev = c
    p["aux_add"] = layers
    p["aux_final"] = _init_linear(next(keys), prev, 2 * latent)

    # decoders
    p["struct"] = _init_linear(next(keys), latent, 3)             # -> coords
    p["exp_dec"] = _init_linear(next(keys), latent, in_channels)  # -> exp
    return p


# ----------------------------------------------------------------------------
# Fused SupCVAE forward (single pallas_call, jitted wrapper)
# ----------------------------------------------------------------------------
def build_supcvae_forward(cfg, in_channels):
    latent = int(cfg["vae_latent_dim"])
    lvar_scale = float(cfg.get("vae_lvar_scale", 1.0))
    emb_chnls = list(cfg["emb_layers_out_chnls"])
    aux_chnls = list(cfg["aux_struct_enc_layers_out_chnls"])
    add_chnls = list(cfg["vae_enc_add_chnls"])
    n_emb, n_aux, n_add = len(emb_chnls), len(aux_chnls), len(add_chnls)

    # Column layout of the packed, lane-dense output slab.
    widths = [3, 3, in_channels] + [latent] * 8
    offsets = [0]
    for w in widths:
        offsets.append(offsets[-1] + w)
    total_w = offsets[-1]
    out_w = _round_up(total_w, _LANE)

    def forward(params, data, key):
        B, C = data.shape
        Bp = max(_SUBLANE, _round_up(B, _SUBLANE))  # pad sublane/batch dim

        k1, k2 = jax.random.split(key)
        noise1 = jax.random.normal(k1, (Bp, latent), jnp.float32)
        noise2 = jax.random.normal(k2, (Bp, latent), jnp.float32)
        data_p = data if Bp == B else jnp.pad(data, ((0, Bp - B), (0, 0)))

        # Split each "final" encoder layer into mean / log-std halves so the
        # kernel never has to column-slice `dist` at an unaligned lane offset.
        def split_final(w, b):
            return [w[:, :latent], b[:, :latent], w[:, latent:], b[:, latent:]]

        flat = []
        for w, b in params["emb_layers"]:
            flat += [w, b]
        for w, b in params["emb_add"]:
            flat += [w, b]
        flat += split_final(*params["emb_final"])
        for w, b in params["aux_layers"]:
            flat += [w, b]
        for w, b in params["aux_add"]:
            flat += [w, b]
        flat += split_final(*params["aux_final"])
        flat += list(params["struct"]) + list(params["exp_dec"])

        def kernel(*refs):
            out_ref = refs[-1]
            it = iter(refs[:-1])
            x = next(it)[...]
            n1 = next(it)[...]
            n2 = next(it)[...]

            def linear(h, act=None):
                w = next(it)[...]
                b = next(it)[...]
                y = jnp.dot(h, w, preferred_element_type=jnp.float32) + b
                return jnp.maximum(y, 0.0) if act == "relu" else y

            def linear_concat(h_list, act=None):
                # One linear applied to the (virtual) lane-concat of h_list:
                # split the weight's rows instead of concatenating activations.
                w = next(it)[...]
                b = next(it)[...]
                acc = None
                off = 0
                for h in h_list:
                    c = h.shape[1]
                    d = jnp.dot(h, w[off:off + c, :],
                                preferred_element_type=jnp.float32)
                    acc = d if acc is None else acc + d
                    off += c
                y = acc + b
                return jnp.maximum(y, 0.0) if act == "relu" else y

            # ---- embedder MLP (output = concat of all layer outputs) -------
            feats = []
            h = x
            for _ in range(n_emb):
                h = linear(h, "relu")
                feats.append(h)

            # ---- 'emb' encoder tail ----------------------------------------
            # TODO(synk): dropout is identity here (inference mode).
            if n_add > 0:
                prev = linear_concat(feats, "relu")
                for _ in range(n_add - 1):
                    prev = linear(prev, "relu")
                emb_mean = linear(prev)
                emb_lstd = linear(prev) * lvar_scale
            else:
                emb_mean = linear_concat(feats)
                emb_lstd = linear_concat(feats) * lvar_scale
            emb_std = jnp.exp(emb_lstd)
            emb_sample = n1 * emb_std + emb_mean

            # ---- aux structural encoder (first 3 input features) -----------
            a = x[:, :3]
            for _ in range(n_aux):
                a = linear(a, "relu")
            prev = a
            for _ in range(n_add):
                prev = linear(prev, "relu")
            aux_mean = linear(prev)
            aux_lstd = linear(prev) * lvar_scale
            aux_std = jnp.exp(aux_lstd)
            aux_sample = n2 * aux_std + aux_mean

            # ---- decoders: 'struct' runs once on stacked samples -----------
            w_s = next(it)[...]
            b_s = next(it)[...]
            stacked = jnp.concatenate([aux_sample, emb_sample], axis=0)
            coords2 = jnp.dot(stacked, w_s,
                              preferred_element_type=jnp.float32) + b_s
            out_coords = coords2[:Bp, :]
            coords_from_exp = coords2[Bp:, :]

            w_x = next(it)[...]
            b_x = next(it)[...]
            out_exp = jnp.dot(emb_sample, w_x,
                              preferred_element_type=jnp.float32) + b_x

            # ---- pack everything into one lane-dense (Bp, out_w) slab ------
            # Each piece is placed into its lane band with a tiny selector
            # matmul (iota-built 0/1 matrix); single full-lane store at the end.
            pieces = [out_coords, coords_from_exp, out_exp,
                      emb_mean, emb_lstd, emb_std, emb_sample,
                      aux_mean, aux_lstd, aux_std, aux_sample]
            slab = jnp.zeros((Bp, out_w), jnp.float32)
            off = 0
            for p in pieces:
                c = p.shape[1]
                rows = jax.lax.broadcasted_iota(jnp.int32, (c, out_w), 0)
                cols = jax.lax.broadcasted_iota(jnp.int32, (c, out_w), 1)
                place = jnp.where(cols == rows + off,
                                  jnp.float32(1.0), jnp.float32(0.0))
                slab = slab + jnp.dot(p, place,
                                      preferred_element_type=jnp.float32)
                off += c
            out_ref[...] = slab

        n_in = 3 + len(flat)
        slab = pl.pallas_call(
            kernel,
            out_shape=jax.ShapeDtypeStruct((Bp, out_w), jnp.float32),
            in_specs=[pl.BlockSpec(memory_space=pltpu.MemorySpace.VMEM)] * n_in,
            out_specs=pl.BlockSpec(memory_space=pltpu.MemorySpace.VMEM),
        )(data_p, noise1, noise2, *flat)

        def col(i):
            return slab[:B, offsets[i]:offsets[i + 1]]

        return {
            "coords": col(0),
            "coords_from_exp": col(1),
            "exp": col(2),
            "emb_mean": col(3),
            "emb_lstd": col(4),
            "emb_std": col(5),
            "emb_sample": col(6),
            "aux_enc_mean": col(7),
            "aux_enc_lstd": col(8),
            "aux_enc_std": col(9),
            "aux_enc_sample": col(10),
        }

    return jax.jit(forward)


# ----------------------------------------------------------------------------
# main
# ----------------------------------------------------------------------------
if __name__ == "__main__":
    cfg = {
        "device": "tpu",
        "dropout_prop": 0.1,
        "emb_layers_out_chnls": [32, 32],
        "aux_struct_enc_layers_out_chnls": [32, 16],
        "vae_enc_add_chnls": [32],
        "vae_latent_dim": 8,
        "vae_lvar_scale": 1.0,
    }
    in_channels = 16
    batch = 2

    root = jax.random.PRNGKey(0)
    k_param, k_data, k_noise = jax.random.split(root, 3)

    params = init_supcvae_params(k_param, in_channels, cfg)
    data = jax.random.normal(k_data, (batch, in_channels), jnp.float32)

    forward = build_supcvae_forward(cfg, in_channels)
    out = forward(params, data, k_noise)
    out = jax.tree_util.tree_map(jax.block_until_ready, out)

    # sanity checks on shapes / values
    assert out["coords"].shape == (batch, 3)
    assert out["exp"].shape == (batch, in_channels)
    assert out["coords_from_exp"].shape == (batch, 3)
    assert out["emb_sample"].shape == (batch, cfg["vae_latent_dim"])
    assert out["aux_enc_sample"].shape == (batch, cfg["vae_latent_dim"])
    assert out["emb_std"].shape == (batch, cfg["vae_latent_dim"])
    for v in out.values():
        assert bool(jnp.all(jnp.isfinite(v)))

    print("KERNEL_OK")
</pallas_src>

<mosaic_0001>
module attributes {stable_mosaic.version = 11 : i64} {
  func.func @kernel(%arg0: memref<8x16xf32, #tpu.memory_space<vmem>>, %arg1: memref<8x8xf32, #tpu.memory_space<vmem>>, %arg2: memref<8x8xf32, #tpu.memory_space<vmem>>, %arg3: memref<16x32xf32, #tpu.memory_space<vmem>>, %arg4: memref<1x32xf32, #tpu.memory_space<vmem>>, %arg5: memref<32x32xf32, #tpu.memory_space<vmem>>, %arg6: memref<1x32xf32, #tpu.memory_space<vmem>>, %arg7: memref<64x32xf32, #tpu.memory_space<vmem>>, %arg8: memref<1x32xf32, #tpu.memory_space<vmem>>, %arg9: memref<32x8xf32, #tpu.memory_space<vmem>>, %arg10: memref<1x8xf32, #tpu.memory_space<vmem>>, %arg11: memref<32x8xf32, #tpu.memory_space<vmem>>, %arg12: memref<1x8xf32, #tpu.memory_space<vmem>>, %arg13: memref<3x32xf32, #tpu.memory_space<vmem>>, %arg14: memref<1x32xf32, #tpu.memory_space<vmem>>, %arg15: memref<32x16xf32, #tpu.memory_space<vmem>>, %arg16: memref<1x16xf32, #tpu.memory_space<vmem>>, %arg17: memref<16x32xf32, #tpu.memory_space<vmem>>, %arg18: memref<1x32xf32, #tpu.memory_space<vmem>>, %arg19: memref<32x8xf32, #tpu.memory_space<vmem>>, %arg20: memref<1x8xf32, #tpu.memory_space<vmem>>, %arg21: memref<32x8xf32, #tpu.memory_space<vmem>>, %arg22: memref<1x8xf32, #tpu.memory_space<vmem>>, %arg23: memref<8x3xf32, #tpu.memory_space<vmem>>, %arg24: memref<1x3xf32, #tpu.memory_space<vmem>>, %arg25: memref<8x16xf32, #tpu.memory_space<vmem>>, %arg26: memref<1x16xf32, #tpu.memory_space<vmem>>, %arg27: memref<8x128xf32, #tpu.memory_space<vmem>>) attributes {dimension_semantics = [], scalar_prefetch = 0 : i64, scratch_operands = 0 : i64, tpu.core_type = #tpu.core_type<tc>} {
    %c0 = arith.constant 0 : index
    %c0_0 = arith.constant 0 : index
    %0 = vector.load %arg0[%c0, %c0_0] : memref<8x16xf32, #tpu.memory_space<vmem>>, vector<8x16xf32>
    %c0_1 = arith.constant 0 : index
    %c0_2 = arith.constant 0 : index
    %1 = vector.load %arg1[%c0_1, %c0_2] : memref<8x8xf32, #tpu.memory_space<vmem>>, vector<8x8xf32>
    %c0_3 = arith.constant 0 : index
    %c0_4 = arith.constant 0 : index
    %2 = vector.load %arg2[%c0_3, %c0_4] : memref<8x8xf32, #tpu.memory_space<vmem>>, vector<8x8xf32>
    %c0_5 = arith.constant 0 : index
    %c0_6 = arith.constant 0 : index
    %3 = vector.load %arg3[%c0_5, %c0_6] : memref<16x32xf32, #tpu.memory_space<vmem>>, vector<16x32xf32>
    %c0_7 = arith.constant 0 : index
    %c0_8 = arith.constant 0 : index
    %4 = vector.load %arg4[%c0_7, %c0_8] : memref<1x32xf32, #tpu.memory_space<vmem>>, vector<1x32xf32>
    %cst = arith.constant dense<0.000000e+00> : vector<8x32xf32>
    %5 = tpu.matmul %0, %3, %cst {dimension_numbers = #tpu.dot_dimension_numbers<[1], [0], [0], [1], [0, 0, 1, 1], [], []>} : vector<8x16xf32>, vector<16x32xf32>, vector<8x32xf32> -> vector<8x32xf32>
    %6 = vector.broadcast %4 : vector<1x32xf32> to vector<8x32xf32>
    %7 = arith.addf %5, %6 : vector<8x32xf32>
    %cst_9 = arith.constant 0.000000e+00 : f32
    %8 = vector.broadcast %cst_9 : f32 to vector<8x32xf32>
    %9 = arith.maximumf %7, %8 : vector<8x32xf32>
    %c0_10 = arith.constant 0 : index
    %c0_11 = arith.constant 0 : index
    %10 = vector.load %arg5[%c0_10, %c0_11] : memref<32x32xf32, #tpu.memory_space<vmem>>, vector<32x32xf32>
    %c0_12 = arith.constant 0 : index
    %c0_13 = arith.constant 0 : index
    %11 = vector.load %arg6[%c0_12, %c0_13] : memref<1x32xf32, #tpu.memory_space<vmem>>, vector<1x32xf32>
    %cst_14 = arith.constant dense<0.000000e+00> : vector<8x32xf32>
    %12 = tpu.matmul %9, %10, %cst_14 {dimension_numbers = #tpu.dot_dimension_numbers<[1], [0], [0], [1], [0, 0, 1, 1], [], []>} : vector<8x32xf32>, vector<32x32xf32>, vector<8x32xf32> -> vector<8x32xf32>
    %13 = vector.broadcast %11 : vector<1x32xf32> to vector<8x32xf32>
    %14 = arith.addf %12, %13 : vector<8x32xf32>
    %cst_15 = arith.constant 0.000000e+00 : f32
    %15 = vector.broadcast %cst_15 : f32 to vector<8x32xf32>
    %16 = arith.maximumf %14, %15 : vector<8x32xf32>
    %c0_16 = arith.constant 0 : index
    %c0_17 = arith.constant 0 : index
    %17 = vector.load %arg7[%c0_16, %c0_17] : memref<64x32xf32, #tpu.memory_space<vmem>>, vector<64x32xf32>
    %c0_18 = arith.constant 0 : index
    %c0_19 = arith.constant 0 : index
    %18 = vector.load %arg8[%c0_18, %c0_19] : memref<1x32xf32, #tpu.memory_space<vmem>>, vector<1x32xf32>
    %19 = vector.extract_strided_slice %17 {offsets = [0, 0], sizes = [32, 32], strides = [1, 1]} : vector<64x32xf32> to vector<32x32xf32>
    %cst_20 = arith.constant dense<0.000000e+00> : vector<8x32xf32>
    %20 = tpu.matmul %9, %19, %cst_20 {dimension_numbers = #tpu.dot_dimension_numbers<[1], [0], [0], [1], [0, 0, 1, 1], [], []>} : vector<8x32xf32>, vector<32x32xf32>, vector<8x32xf32> -> vector<8x32xf32>
    %21 = vector.extract_strided_slice %17 {offsets = [32, 0], sizes = [32, 32], strides = [1, 1]} : vector<64x32xf32> to vector<32x32xf32>
    %cst_21 = arith.constant dense<0.000000e+00> : vector<8x32xf32>
    %22 = tpu.matmul %16, %21, %cst_21 {dimension_numbers = #tpu.dot_dimension_numbers<[1], [0], [0], [1], [0, 0, 1, 1], [], []>} : vector<8x32xf32>, vector<32x32xf32>, vector<8x32xf32> -> vector<8x32xf32>
    %23 = arith.addf %20, %22 : vector<8x32xf32>
    %24 = vector.broadcast %18 : vector<1x32xf32> to vector<8x32xf32>
    %25 = arith.addf %23, %24 : vector<8x32xf32>
    %cst_22 = arith.constant 0.000000e+00 : f32
    %26 = vector.broadcast %cst_22 : f32 to vector<8x32xf32>
    %27 = arith.maximumf %25, %26 : vector<8x32xf32>
    %c0_23 = arith.constant 0 : index
    %c0_24 = arith.constant 0 : index
    %28 = vector.load %arg9[%c0_23, %c0_24] : memref<32x8xf32, #tpu.memory_space<vmem>>, vector<32x8xf32>
    %c0_25 = arith.constant 0 : index
    %c0_26 = arith.constant 0 : index
    %29 = vector.load %arg10[%c0_25, %c0_26] : memref<1x8xf32, #tpu.memory_space<vmem>>, vector<1x8xf32>
    %cst_27 = arith.constant dense<0.000000e+00> : vector<8x8xf32>
    %30 = tpu.matmul %27, %28, %cst_27 {dimension_numbers = #tpu.dot_dimension_numbers<[1], [0], [0], [1], [0, 0, 1, 1], [], []>} : vector<8x32xf32>, vector<32x8xf32>, vector<8x8xf32> -> vector<8x8xf32>
    %31 = vector.broadcast %29 : vector<1x8xf32> to vector<8x8xf32>
    %32 = arith.addf %30, %31 : vector<8x8xf32>
    %c0_28 = arith.constant 0 : index
    %c0_29 = arith.constant 0 : index
    %33 = vector.load %arg11[%c0_28, %c0_29] : memref<32x8xf32, #tpu.memory_space<vmem>>, vector<32x8xf32>
    %c0_30 = arith.constant 0 : index
    %c0_31 = arith.constant 0 : index
    %34 = vector.load %arg12[%c0_30, %c0_31] : memref<1x8xf32, #tpu.memory_space<vmem>>, vector<1x8xf32>
    %cst_32 = arith.constant dense<0.000000e+00> : vector<8x8xf32>
    %35 = tpu.matmul %27, %33, %cst_32 {dimension_numbers = #tpu.dot_dimension_numbers<[1], [0], [0], [1], [0, 0, 1, 1], [], []>} : vector<8x32xf32>, vector<32x8xf32>, vector<8x8xf32> -> vector<8x8xf32>
    %36 = vector.broadcast %34 : vector<1x8xf32> to vector<8x8xf32>
    %37 = arith.addf %35, %36 : vector<8x8xf32>
    %cst_33 = arith.constant 1.000000e+00 : f32
    %38 = vector.broadcast %cst_33 : f32 to vector<8x8xf32>
    %39 = arith.mulf %37, %38 : vector<8x8xf32>
    %40 = math.exp %39 : vector<8x8xf32>
    %41 = arith.mulf %1, %40 : vector<8x8xf32>
    %42 = arith.addf %41, %32 : vector<8x8xf32>
    %43 = vector.extract_strided_slice %0 {offsets = [0, 0], sizes = [8, 3], strides = [1, 1]} : vector<8x16xf32> to vector<8x3xf32>
    %c0_34 = arith.constant 0 : index
    %c0_35 = arith.constant 0 : index
    %44 = vector.load %arg13[%c0_34, %c0_35] : memref<3x32xf32, #tpu.memory_space<vmem>>, vector<3x32xf32>
    %c0_36 = arith.constant 0 : index
    %c0_37 = arith.constant 0 : index
    %45 = vector.load %arg14[%c0_36, %c0_37] : memref<1x32xf32, #tpu.memory_space<vmem>>, vector<1x32xf32>
    %cst_38 = arith.constant dense<0.000000e+00> : vector<8x32xf32>
    %46 = tpu.matmul %43, %44, %cst_38 {dimension_numbers = #tpu.dot_dimension_numbers<[1], [0], [0], [1], [0, 0, 1, 1], [], []>} : vector<8x3xf32>, vector<3x32xf32>, vector<8x32xf32> -> vector<8x32xf32>
    %47 = vector.broadcast %45 : vector<1x32xf32> to vector<8x32xf32>
    %48 = arith.addf %46, %47 : vector<8x32xf32>
    %cst_39 = arith.constant 0.000000e+00 : f32
    %49 = vector.broadcast %cst_39 : f32 to vector<8x32xf32>
    %50 = arith.maximumf %48, %49 : vector<8x32xf32>
    %c0_40 = arith.constant 0 : index
    %c0_41 = arith.constant 0 : index
    %51 = vector.load %arg15[%c0_40, %c0_41] : memref<32x16xf32, #tpu.memory_space<vmem>>, vector<32x16xf32>
    %c0_42 = arith.constant 0 : index
    %c0_43 = arith.constant 0 : index
    %52 = vector.load %arg16[%c0_42, %c0_43] : memref<1x16xf32, #tpu.memory_space<vmem>>, vector<1x16xf32>
    %cst_44 = arith.constant dense<0.000000e+00> : vector<8x16xf32>
    %53 = tpu.matmul %50, %51, %cst_44 {dimension_numbers = #tpu.dot_dimension_numbers<[1], [0], [0], [1], [0, 0, 1, 1], [], []>} : vector<8x32xf32>, vector<32x16xf32>, vector<8x16xf32> -> vector<8x16xf32>
    %54 = vector.broadcast %52 : vector<1x16xf32> to vector<8x16xf32>
    %55 = arith.addf %53, %54 : vector<8x16xf32>
    %cst_45 = arith.constant 0.000000e+00 : f32
    %56 = vector.broadcast %cst_45 : f32 to vector<8x16xf32>
    %57 = arith.maximumf %55, %56 : vector<8x16xf32>
    %c0_46 = arith.constant 0 : index
    %c0_47 = arith.constant 0 : index
    %58 = vector.load %arg17[%c0_46, %c0_47] : memref<16x32xf32, #tpu.memory_space<vmem>>, vector<16x32xf32>
    %c0_48 = arith.constant 0 : index
    %c0_49 = arith.constant 0 : index
    %59 = vector.load %arg18[%c0_48, %c0_49] : memref<1x32xf32, #tpu.memory_space<vmem>>, vector<1x32xf32>
    %cst_50 = arith.constant dense<0.000000e+00> : vector<8x32xf32>
    %60 = tpu.matmul %57, %58, %cst_50 {dimension_numbers = #tpu.dot_dimension_numbers<[1], [0], [0], [1], [0, 0, 1, 1], [], []>} : vector<8x16xf32>, vector<16x32xf32>, vector<8x32xf32> -> vector<8x32xf32>
    %61 = vector.broadcast %59 : vector<1x32xf32> to vector<8x32xf32>
    %62 = arith.addf %60, %61 : vector<8x32xf32>
    %cst_51 = arith.constant 0.000000e+00 : f32
    %63 = vector.broadcast %cst_51 : f32 to vector<8x32xf32>
    %64 = arith.maximumf %62, %63 : vector<8x32xf32>
    %c0_52 = arith.constant 0 : index
    %c0_53 = arith.constant 0 : index
    %65 = vector.load %arg19[%c0_52, %c0_53] : memref<32x8xf32, #tpu.memory_space<vmem>>, vector<32x8xf32>
    %c0_54 = arith.constant 0 : index
    %c0_55 = arith.constant 0 : index
    %66 = vector.load %arg20[%c0_54, %c0_55] : memref<1x8xf32, #tpu.memory_space<vmem>>, vector<1x8xf32>
    %cst_56 = arith.constant dense<0.000000e+00> : vector<8x8xf32>
    %67 = tpu.matmul %64, %65, %cst_56 {dimension_numbers = #tpu.dot_dimension_numbers<[1], [0], [0], [1], [0, 0, 1, 1], [], []>} : vector<8x32xf32>, vector<32x8xf32>, vector<8x8xf32> -> vector<8x8xf32>
    %68 = vector.broadcast %66 : vector<1x8xf32> to vector<8x8xf32>
    %69 = arith.addf %67, %68 : vector<8x8xf32>
    %c0_57 = arith.constant 0 : index
    %c0_58 = arith.constant 0 : index
    %70 = vector.load %arg21[%c0_57, %c0_58] : memref<32x8xf32, #tpu.memory_space<vmem>>, vector<32x8xf32>
    %c0_59 = arith.constant 0 : index
    %c0_60 = arith.constant 0 : index
    %71 = vector.load %arg22[%c0_59, %c0_60] : memref<1x8xf32, #tpu.memory_space<vmem>>, vector<1x8xf32>
    %cst_61 = arith.constant dense<0.000000e+00> : vector<8x8xf32>
    %72 = tpu.matmul %64, %70, %cst_61 {dimension_numbers = #tpu.dot_dimension_numbers<[1], [0], [0], [1], [0, 0, 1, 1], [], []>} : vector<8x32xf32>, vector<32x8xf32>, vector<8x8xf32> -> vector<8x8xf32>
    %73 = vector.broadcast %71 : vector<1x8xf32> to vector<8x8xf32>
    %74 = arith.addf %72, %73 : vector<8x8xf32>
    %cst_62 = arith.constant 1.000000e+00 : f32
    %75 = vector.broadcast %cst_62 : f32 to vector<8x8xf32>
    %76 = arith.mulf %74, %75 : vector<8x8xf32>
    %77 = math.exp %76 : vector<8x8xf32>
    %78 = arith.mulf %2, %77 : vector<8x8xf32>
    %79 = arith.addf %78, %69 : vector<8x8xf32>
    %c0_63 = arith.constant 0 : index
    %c0_64 = arith.constant 0 : index
    %80 = vector.load %arg23[%c0_63, %c0_64] : memref<8x3xf32, #tpu.memory_space<vmem>>, vector<8x3xf32>
    %c0_65 = arith.constant 0 : index
    %c0_66 = arith.constant 0 : index
    %81 = vector.load %arg24[%c0_65, %c0_66] : memref<1x3xf32, #tpu.memory_space<vmem>>, vector<1x3xf32>
    %82 = tpu.concatenate %79, %42 in 0 : vector<8x8xf32>, vector<8x8xf32> -> vector<16x8xf32>
    %cst_67 = arith.constant dense<0.000000e+00> : vector<16x3xf32>
    %83 = tpu.matmul %82, %80, %cst_67 {dimension_numbers = #tpu.dot_dimension_numbers<[1], [0], [0], [1], [0, 0, 1, 1], [], []>} : vector<16x8xf32>, vector<8x3xf32>, vector<16x3xf32> -> vector<16x3xf32>
    %84 = vector.broadcast %81 : vector<1x3xf32> to vector<16x3xf32>
    %85 = arith.addf %83, %84 : vector<16x3xf32>
    %86 = vector.extract_strided_slice %85 {offsets = [0, 0], sizes = [8, 3], strides = [1, 1]} : vector<16x3xf32> to vector<8x3xf32>
    %87 = vector.extract_strided_slice %85 {offsets = [8, 0], sizes = [8, 3], strides = [1, 1]} : vector<16x3xf32> to vector<8x3xf32>
    %c0_68 = arith.constant 0 : index
    %c0_69 = arith.constant 0 : index
    %88 = vector.load %arg25[%c0_68, %c0_69] : memref<8x16xf32, #tpu.memory_space<vmem>>, vector<8x16xf32>
    %c0_70 = arith.constant 0 : index
    %c0_71 = arith.constant 0 : index
    %89 = vector.load %arg26[%c0_70, %c0_71] : memref<1x16xf32, #tpu.memory_space<vmem>>, vector<1x16xf32>
    %cst_72 = arith.constant dense<0.000000e+00> : vector<8x16xf32>
    %90 = tpu.matmul %42, %88, %cst_72 {dimension_numbers = #tpu.dot_dimension_numbers<[1], [0], [0], [1], [0, 0, 1, 1], [], []>} : vector<8x8xf32>, vector<8x16xf32>, vector<8x16xf32> -> vector<8x16xf32>
    %91 = vector.broadcast %89 : vector<1x16xf32> to vector<8x16xf32>
    %92 = arith.addf %90, %91 : vector<8x16xf32>
    %cst_73 = arith.constant 0.000000e+00 : f32
    %93 = vector.broadcast %cst_73 : f32 to vector<8x128xf32>
    %94 = tpu.iota {dimensions = array<i32: 0>} : vector<3x128xi32>
    %95 = tpu.iota {dimensions = array<i32: 1>} : vector<3x128xi32>
    %c0_i32 = arith.constant 0 : i32
    %96 = vector.broadcast %c0_i32 : i32 to vector<3x128xi32>
    %97 = arith.addi %94, %96 : vector<3x128xi32>
    %98 = arith.cmpi eq, %95, %97 : vector<3x128xi32>
    %cst_74 = arith.constant 1.000000e+00 : f32
    %cst_75 = arith.constant 0.000000e+00 : f32
    %99 = vector.broadcast %cst_74 : f32 to vector<3x128xf32>
    %100 = vector.broadcast %cst_75 : f32 to vector<3x128xf32>
    %101 = arith.select %98, %99, %100 : vector<3x128xi1>, vector<3x128xf32>
    %cst_76 = arith.constant dense<0.000000e+00> : vector<8x128xf32>
    %102 = tpu.matmul %86, %101, %cst_76 {dimension_numbers = #tpu.dot_dimension_numbers<[1], [0], [0], [1], [0, 0, 1, 1], [], []>} : vector<8x3xf32>, vector<3x128xf32>, vector<8x128xf32> -> vector<8x128xf32>
    %103 = arith.addf %93, %102 : vector<8x128xf32>
    %104 = tpu.iota {dimensions = array<i32: 0>} : vector<3x128xi32>
    %105 = tpu.iota {dimensions = array<i32: 1>} : vector<3x128xi32>
    %c3_i32 = arith.constant 3 : i32
    %106 = vector.broadcast %c3_i32 : i32 to vector<3x128xi32>
    %107 = arith.addi %104, %106 : vector<3x128xi32>
    %108 = arith.cmpi eq, %105, %107 : vector<3x128xi32>
    %cst_77 = arith.constant 1.000000e+00 : f32
    %cst_78 = arith.constant 0.000000e+00 : f32
    %109 = vector.broadcast %cst_77 : f32 to vector<3x128xf32>
    %110 = vector.broadcast %cst_78 : f32 to vector<3x128xf32>
    %111 = arith.select %108, %109, %110 : vector<3x128xi1>, vector<3x128xf32>
    %cst_79 = arith.constant dense<0.000000e+00> : vector<8x128xf32>
    %112 = tpu.matmul %87, %111, %cst_79 {dimension_numbers = #tpu.dot_dimension_numbers<[1], [0], [0], [1], [0, 0, 1, 1], [], []>} : vector<8x3xf32>, vector<3x128xf32>, vector<8x128xf32> -> vector<8x128xf32>
    %113 = arith.addf %103, %112 : vector<8x128xf32>
    %114 = tpu.iota {dimensions = array<i32: 0>} : vector<16x128xi32>
    %115 = tpu.iota {dimensions = array<i32: 1>} : vector<16x128xi32>
    %c6_i32 = arith.constant 6 : i32
    %116 = vector.broadcast %c6_i32 : i32 to vector<16x128xi32>
    %117 = arith.addi %114, %116 : vector<16x128xi32>
    %118 = arith.cmpi eq, %115, %117 : vector<16x128xi32>
    %cst_80 = arith.constant 1.000000e+00 : f32
    %cst_81 = arith.constant 0.000000e+00 : f32
    %119 = vector.broadcast %cst_80 : f32 to vector<16x128xf32>
    %120 = vector.broadcast %cst_81 : f32 to vector<16x128xf32>
    %121 = arith.select %118, %119, %120 : vector<16x128xi1>, vector<16x128xf32>
    %cst_82 = arith.constant dense<0.000000e+00> : vector<8x128xf32>
    %122 = tpu.matmul %92, %121, %cst_82 {dimension_numbers = #tpu.dot_dimension_numbers<[1], [0], [0], [1], [0, 0, 1, 1], [], []>} : vector<8x16xf32>, vector<16x128xf32>, vector<8x128xf32> -> vector<8x128xf32>
    %123 = arith.addf %113, %122 : vector<8x128xf32>
    %124 = tpu.iota {dimensions = array<i32: 0>} : vector<8x128xi32>
    %125 = tpu.iota {dimensions = array<i32: 1>} : vector<8x128xi32>
    %c22_i32 = arith.constant 22 : i32
    %126 = vector.broadcast %c22_i32 : i32 to vector<8x128xi32>
    %127 = arith.addi %124, %126 : vector<8x128xi32>
    %128 = arith.cmpi eq, %125, %127 : vector<8x128xi32>
    %cst_83 = arith.constant 1.000000e+00 : f32
    %cst_84 = arith.constant 0.000000e+00 : f32
    %129 = vector.broadcast %cst_83 : f32 to vector<8x128xf32>
    %130 = vector.broadcast %cst_84 : f32 to vector<8x128xf32>
    %131 = arith.select %128, %129, %130 : vector<8x128xi1>, vector<8x128xf32>
    %cst_85 = arith.constant dense<0.000000e+00> : vector<8x128xf32>
    %132 = tpu.matmul %32, %131, %cst_85 {dimension_numbers = #tpu.dot_dimension_numbers<[1], [0], [0], [1], [0, 0, 1, 1], [], []>} : vector<8x8xf32>, vector<8x128xf32>, vector<8x128xf32> -> vector<8x128xf32>
    %133 = arith.addf %123, %132 : vector<8x128xf32>
    %134 = tpu.iota {dimensions = array<i32: 0>} : vector<8x128xi32>
    %135 = tpu.iota {dimensions = array<i32: 1>} : vector<8x128xi32>
    %c30_i32 = arith.constant 30 : i32
    %136 = vector.broadcast %c30_i32 : i32 to vector<8x128xi32>
    %137 = arith.addi %134, %136 : vector<8x128xi32>
    %138 = arith.cmpi eq, %135, %137 : vector<8x128xi32>
    %cst_86 = arith.constant 1.000000e+00 : f32
    %cst_87 = arith.constant 0.000000e+00 : f32
    %139 = vector.broadcast %cst_86 : f32 to vector<8x128xf32>
    %140 = vector.broadcast %cst_87 : f32 to vector<8x128xf32>
    %141 = arith.select %138, %139, %140 : vector<8x128xi1>, vector<8x128xf32>
    %cst_88 = arith.constant dense<0.000000e+00> : vector<8x128xf32>
    %142 = tpu.matmul %39, %141, %cst_88 {dimension_numbers = #tpu.dot_dimension_numbers<[1], [0], [0], [1], [0, 0, 1, 1], [], []>} : vector<8x8xf32>, vector<8x128xf32>, vector<8x128xf32> -> vector<8x128xf32>
    %143 = arith.addf %133, %142 : vector<8x128xf32>
    %144 = tpu.iota {dimensions = array<i32: 0>} : vector<8x128xi32>
    %145 = tpu.iota {dimensions = array<i32: 1>} : vector<8x128xi32>
    %c38_i32 = arith.constant 38 : i32
    %146 = vector.broadcast %c38_i32 : i32 to vector<8x128xi32>
    %147 = arith.addi %144, %146 : vector<8x128xi32>
    %148 = arith.cmpi eq, %145, %147 : vector<8x128xi32>
    %cst_89 = arith.constant 1.000000e+00 : f32
    %cst_90 = arith.constant 0.000000e+00 : f32
    %149 = vector.broadcast %cst_89 : f32 to vector<8x128xf32>
    %150 = vector.broadcast %cst_90 : f32 to vector<8x128xf32>
    %151 = arith.select %148, %149, %150 : vector<8x128xi1>, vector<8x128xf32>
    %cst_91 = arith.constant dense<0.000000e+00> : vector<8x128xf32>
    %152 = tpu.matmul %40, %151, %cst_91 {dimension_numbers = #tpu.dot_dimension_numbers<[1], [0], [0], [1], [0, 0, 1, 1], [], []>} : vector<8x8xf32>, vector<8x128xf32>, vector<8x128xf32> -> vector<8x128xf32>
    %153 = arith.addf %143, %152 : vector<8x128xf32>
    %154 = tpu.iota {dimensions = array<i32: 0>} : vector<8x128xi32>
    %155 = tpu.iota {dimensions = array<i32: 1>} : vector<8x128xi32>
    %c46_i32 = arith.constant 46 : i32
    %156 = vector.broadcast %c46_i32 : i32 to vector<8x128xi32>
    %157 = arith.addi %154, %156 : vector<8x128xi32>
    %158 = arith.cmpi eq, %155, %157 : vector<8x128xi32>
    %cst_92 = arith.constant 1.000000e+00 : f32
    %cst_93 = arith.constant 0.000000e+00 : f32
    %159 = vector.broadcast %cst_92 : f32 to vector<8x128xf32>
    %160 = vector.broadcast %cst_93 : f32 to vector<8x128xf32>
    %161 = arith.select %158, %159, %160 : vector<8x128xi1>, vector<8x128xf32>
    %cst_94 = arith.constant dense<0.000000e+00> : vector<8x128xf32>
    %162 = tpu.matmul %42, %161, %cst_94 {dimension_numbers = #tpu.dot_dimension_numbers<[1], [0], [0], [1], [0, 0, 1, 1], [], []>} : vector<8x8xf32>, vector<8x128xf32>, vector<8x128xf32> -> vector<8x128xf32>
    %163 = arith.addf %153, %162 : vector<8x128xf32>
    %164 = tpu.iota {dimensions = array<i32: 0>} : vector<8x128xi32>
    %165 = tpu.iota {dimensions = array<i32: 1>} : vector<8x128xi32>
    %c54_i32 = arith.constant 54 : i32
    %166 = vector.broadcast %c54_i32 : i32 to vector<8x128xi32>
    %167 = arith.addi %164, %166 : vector<8x128xi32>
    %168 = arith.cmpi eq, %165, %167 : vector<8x128xi32>
    %cst_95 = arith.constant 1.000000e+00 : f32
    %cst_96 = arith.constant 0.000000e+00 : f32
    %169 = vector.broadcast %cst_95 : f32 to vector<8x128xf32>
    %170 = vector.broadcast %cst_96 : f32 to vector<8x128xf32>
    %171 = arith.select %168, %169, %170 : vector<8x128xi1>, vector<8x128xf32>
    %cst_97 = arith.constant dense<0.000000e+00> : vector<8x128xf32>
    %172 = tpu.matmul %69, %171, %cst_97 {dimension_numbers = #tpu.dot_dimension_numbers<[1], [0], [0], [1], [0, 0, 1, 1], [], []>} : vector<8x8xf32>, vector<8x128xf32>, vector<8x128xf32> -> vector<8x128xf32>
    %173 = arith.addf %163, %172 : vector<8x128xf32>
    %174 = tpu.iota {dimensions = array<i32: 0>} : vector<8x128xi32>
    %175 = tpu.iota {dimensions = array<i32: 1>} : vector<8x128xi32>
    %c62_i32 = arith.constant 62 : i32
    %176 = vector.broadcast %c62_i32 : i32 to vector<8x128xi32>
    %177 = arith.addi %174, %176 : vector<8x128xi32>
    %178 = arith.cmpi eq, %175, %177 : vector<8x128xi32>
    %cst_98 = arith.constant 1.000000e+00 : f32
    %cst_99 = arith.constant 0.000000e+00 : f32
    %179 = vector.broadcast %cst_98 : f32 to vector<8x128xf32>
    %180 = vector.broadcast %cst_99 : f32 to vector<8x128xf32>
    %181 = arith.select %178, %179, %180 : vector<8x128xi1>, vector<8x128xf32>
    %cst_100 = arith.constant dense<0.000000e+00> : vector<8x128xf32>
    %182 = tpu.matmul %76, %181, %cst_100 {dimension_numbers = #tpu.dot_dimension_numbers<[1], [0], [0], [1], [0, 0, 1, 1], [], []>} : vector<8x8xf32>, vector<8x128xf32>, vector<8x128xf32> -> vector<8x128xf32>
    %183 = arith.addf %173, %182 : vector<8x128xf32>
    %184 = tpu.iota {dimensions = array<i32: 0>} : vector<8x128xi32>
    %185 = tpu.iota {dimensions = array<i32: 1>} : vector<8x128xi32>
    %c70_i32 = arith.constant 70 : i32
    %186 = vector.broadcast %c70_i32 : i32 to vector<8x128xi32>
    %187 = arith.addi %184, %186 : vector<8x128xi32>
    %188 = arith.cmpi eq, %185, %187 : vector<8x128xi32>
    %cst_101 = arith.constant 1.000000e+00 : f32
    %cst_102 = arith.constant 0.000000e+00 : f32
    %189 = vector.broadcast %cst_101 : f32 to vector<8x128xf32>
    %190 = vector.broadcast %cst_102 : f32 to vector<8x128xf32>
    %191 = arith.select %188, %189, %190 : vector<8x128xi1>, vector<8x128xf32>
    %cst_103 = arith.constant dense<0.000000e+00> : vector<8x128xf32>
    %192 = tpu.matmul %77, %191, %cst_103 {dimension_numbers = #tpu.dot_dimension_numbers<[1], [0], [0], [1], [0, 0, 1, 1], [], []>} : vector<8x8xf32>, vector<8x128xf32>, vector<8x128xf32> -> vector<8x128xf32>
    %193 = arith.addf %183, %192 : vector<8x128xf32>
    %194 = tpu.iota {dimensions = array<i32: 0>} : vector<8x128xi32>
    %195 = tpu.iota {dimensions = array<i32: 1>} : vector<8x128xi32>
    %c78_i32 = arith.constant 78 : i32
    %196 = vector.broadcast %c78_i32 : i32 to vector<8x128xi32>
    %197 = arith.addi %194, %196 : vector<8x128xi32>
    %198 = arith.cmpi eq, %195, %197 : vector<8x128xi32>
    %cst_104 = arith.constant 1.000000e+00 : f32
    %cst_105 = arith.constant 0.000000e+00 : f32
    %199 = vector.broadcast %cst_104 : f32 to vector<8x128xf32>
    %200 = vector.broadcast %cst_105 : f32 to vector<8x128xf32>
    %201 = arith.select %198, %199, %200 : vector<8x128xi1>, vector<8x128xf32>
    %cst_106 = arith.constant dense<0.000000e+00> : vector<8x128xf32>
    %202 = tpu.matmul %79, %201, %cst_106 {dimension_numbers = #tpu.dot_dimension_numbers<[1], [0], [0], [1], [0, 0, 1, 1], [], []>} : vector<8x8xf32>, vector<8x128xf32>, vector<8x128xf32> -> vector<8x128xf32>
    %203 = arith.addf %193, %202 : vector<8x128xf32>
    %c0_107 = arith.constant 0 : index
    %c0_108 = arith.constant 0 : index
    %204 = vector.load %arg27[%c0_107, %c0_108] : memref<8x128xf32, #tpu.memory_space<vmem>>, vector<8x128xf32>
    tpu.vector_store %arg27[%c0_107, %c0_108], %203 {strides = array<i32>} : memref<8x128xf32, #tpu.memory_space<vmem>>, vector<8x128xf32>,
    return
  }
}

</mosaic_0001>

<bundles_post_ra>
// kernel: forward.1
= control target key start
LH: loop header
LB: loop body
LE: loop exit
PB: predicated region body
PF: predicated region fallthrough
CT: control target
= control target key end

     0   :  { %v2343_v0 = vmov 0.0   ;;  %vm2344_vm0 = vmmov 0   ;;  %vm98_vm1 = vcmask 130048   ;;  %vm184_vm2 = vcmask 261120   ;;  %s2845_s3 = inlined_call_operand.vmem [shape: f32[16,32], index: 3, kind: input, shape index: {}]   ;;  %s2846_s0 = inlined_call_operand.vmem [shape: f32[8,16], index: 0, kind: input, shape index: {}]   ;;  %s2847_s5 = inlined_call_operand.vmem [shape: f32[32,32], index: 5, kind: input, shape index: {}]   ;;  %s2848_s7 = inlined_call_operand.vmem [shape: f32[64,32], index: 7, kind: input, shape index: {}]   ;;  %s2849_s4 = inlined_call_operand.vmem [shape: f32[1,32], index: 4, kind: input, shape index: {}]   ;;  %s2850_s6 = inlined_call_operand.vmem [shape: f32[1,32], index: 6, kind: input, shape index: {}]   ;;  %s2851_s9 = inlined_call_operand.vmem [shape: f32[32,8], index: 9, kind: input, shape index: {}]   ;;  %s2852_s11 = inlined_call_operand.vmem [shape: f32[32,8], index: 11, kind: input, shape index: {}]   ;;  %s2853_s8 = inlined_call_operand.vmem [shape: f32[1,32], index: 8, kind: input, shape index: {}]   ;;  %s2854_s13 = inlined_call_operand.vmem [shape: f32[3,32], index: 13, kind: input, shape index: {}]   ;;  %s2855_s15 = inlined_call_operand.vmem [shape: f32[32,16], index: 15, kind: input, shape index: {}]   ;;  %s2856_s14 = inlined_call_operand.vmem [shape: f32[1,32], index: 14, kind: input, shape index: {}]   ;;  %s2857_s17 = inlined_call_operand.vmem [shape: f32[16,32], index: 17, kind: input, shape index: {}]   ;;  %s2858_s21 = inlined_call_operand.vmem [shape: f32[32,8], index: 21, kind: input, shape index: {}]   ;;  %s2859_s16 = inlined_call_operand.vmem [shape: f32[1,16], index: 16, kind: input, shape index: {}]   ;;  %s2860_s19 = inlined_call_operand.vmem [shape: f32[32,8], index: 19, kind: input, shape index: {}]   ;;  %s2861_s12 = inlined_call_operand.vmem [shape: f32[1,8], index: 12, kind: input, shape index: {}]   ;;  %s2862_s18 = inlined_call_operand.vmem [shape: f32[1,32], index: 18, kind: input, shape index: {}]   ;;  %s2863_s1 = inlined_call_operand.vmem [shape: f32[8,8], index: 1, kind: input, shape index: {}]   ;;  %s2864_s10 = inlined_call_operand.vmem [shape: f32[1,8], index: 10, kind: input, shape index: {}]   ;;  %s2865_s25 = inlined_call_operand.vmem [shape: f32[8,16], index: 25, kind: input, shape index: {}]   ;;  %s2866_s23 = inlined_call_operand.vmem [shape: f32[8,3], index: 23, kind: input, shape index: {}]   ;;  %s2867_s22 = inlined_call_operand.vmem [shape: f32[1,8], index: 22, kind: input, shape index: {}]   ;;  %s2868_s20 = inlined_call_operand.vmem [shape: f32[1,8], index: 20, kind: input, shape index: {}]   ;;  %s2869_s2 = inlined_call_operand.vmem [shape: f32[8,8], index: 2, kind: input, shape index: {}]   ;;  %s2870_s24 = inlined_call_operand.vmem [shape: f32[1,3], index: 24, kind: input, shape index: {}]   ;;  %s2871_s26 = inlined_call_operand.vmem [shape: f32[1,16], index: 26, kind: input, shape index: {}]   ;;  %s2872_s27 = inlined_call_operand.vmem [shape: f32[8,128], index: 27, kind: output, shape index: {}]  }
   0x1   :  { %2879 = sst [smem:[#allocation2_spill]] %s2845_s3  ;;  %2162 = vmatprep.subr.mxu0 %v2343_v0  ;;  %2166 = vmatprep.mubr.msk.f32.mxu0 %vm2344_vm0, %v2343_v0  ;;  %vm599_vm3 = vcmask 1042432   ;;  %vm596_vm4 = vcmask 23552   ;;  %v760_v56 = vld [vmem:[%s2857_s17 + $0x8] sm:$0xff]  ;;  %v759_v57 = vld [vmem:[%s2857_s17] sm:$0xff]  ;;  %v929_v58 = vld [vmem:[%s2858_s21 + $0x18] sm:$0xff] }
   0x2   :  { %2880 = sst [smem:[#allocation3_spill]] %s2846_s0  ;;  %2169 = vmatprep.subr.mxu1 %v2343_v0  ;;  %2177 = vmatprep.mubr.msk.f32.mxu1 %vm2344_vm0, %v2343_v0  ;;  %v2050_v59 = vld [vmem:[%s2859_s16] ss:$0 sm:$0xff]  ;;  %vm1019_vm5 = vcmask 64512  }
   0x3   :  { %2881 = sst [smem:[#allocation4_spill]] %s2847_s5 }
   0x4   :  { %2882 = sst [smem:[#allocation5_spill]] %s2848_s7 }
   0x5   :  { %2883 = sst [smem:[#allocation6_spill]] %s2849_s4 }
   0x6   :  { %2884 = sst [smem:[#allocation7_spill]] %s2850_s6 }
   0x7   :  { %2885 = sst [smem:[#allocation8_spill]] %s2851_s9 }
   0x8   :  { %2886 = sst [smem:[#allocation9_spill]] %s2852_s11 }
   0x9   :  { %2887 = sst [smem:[#allocation10_spill]] %s2853_s8 }
   0xa   :  { %2888 = sst [smem:[#allocation11_spill]] %s2854_s13 }
   0xb   :  { %2889 = sst [smem:[#allocation12_spill]] %s2855_s15 }
   0xc   :  { %2890 = sst [smem:[#allocation13_spill]] %s2856_s14 }
   0xd   :  { %s2891_s8 = sld [smem:[#allocation2_spill]] }
   0xe   :  { %s2892_s0 = sld [smem:[#allocation3_spill]] }
   0xf   :  { %s2893_s3 = sld [smem:[#allocation4_spill]] }
  0x10   :  { %s2894_s13 = sld [smem:[#allocation5_spill]] }
  0x11   :  { %s2897_s4 = sld [smem:[#allocation8_spill]] }
  0x12   :  { %s2898_s11 = sld [smem:[#allocation9_spill]] }
  0x13   :  { %v90_v1 = vld [vmem:[%s2891_s8 + $0x8] sm:$0xff]  ;;  %v89_v2 = vld [vmem:[%s2891_s8] sm:$0xff]  ;;  %s2899_s8 = sld [smem:[#allocation10_spill]] }
  0x14   :  { %2163 = vmatpush3.msra.mxu0 %v90_v1  ;;  %v2498_v3 = vld [vmem:[%s2892_s0] sm:$0xff]  ;;  %s2895_s0 = sld [smem:[#allocation6_spill]]  ;;  %v845_v1 = vld [vmem:[%s2860_s19 + $0x18] sm:$0xff] }
  0x15   :  { %v176_v4 = vld [vmem:[%s2893_s3 + $0x18] sm:$0xff]  ;;  %v175_v5 = vld [vmem:[%s2893_s3 + $0x10] sm:$0xff]  ;;  %2164 = vmatprep.subr.mxu0 %v2343_v0  ;;  %v174_v6 = vld [vmem:[%s2893_s3 + $0x8] sm:$0xff]  ;;  %s2900_s30 = sld [smem:[#allocation11_spill]] }
  0x16   :  { %2170 = vmatpush3.msra.mxu1 %v176_v4  ;;  %2165 = vmatpush3.msra.mxu0 %v89_v2  ;;  %v173_v7 = vld [vmem:[%s2893_s3] sm:$0xff]  ;;  %v266_v8 = vld [vmem:[%s2894_s13 + $0x38] sm:$0xff]  ;;  %v261_v15 = vld [vmem:[%s2894_s13 + $0x10] sm:$0xff]  ;;  %s2896_s3 = sld [smem:[#allocation7_spill]] }
  0x17   :  { %2171 = vmatprep.subr.mxu1 %v2343_v0  ;;  %2167 = vmatmul.mubr.msk.f32.vlgmr.msra.gmra.mxu0 %vm98_vm1, %v2498_v3  ;;  %v262_v14 = vld [vmem:[%s2894_s13 + $0x18] sm:$0xff]  ;;  %v260_v16 = vld [vmem:[%s2894_s13 + $0x8] sm:$0xff]  ;;  %v259_v17 = vld [vmem:[%s2894_s13] sm:$0xff] }
  0x18   :  { %2172 = vmatpush3.msra.mxu1 %v175_v5  ;;  %2180 = vmatprep.subr.mxu0 %v2343_v0  ;;  %v265_v18 = vld [vmem:[%s2894_s13 + $0x30] sm:$0xff]  ;;  %v264_v19 = vld [vmem:[%s2894_s13 + $0x28] sm:$0xff]  ;;  %v263_v20 = vld [vmem:[%s2894_s13 + $0x20] sm:$0xff] }
  0x19   :  { %2173 = vmatprep.subr.mxu1 %v2343_v0  ;;  %2188 = vmatprep.mubr.msk.f32.mxu0 %vm2344_vm0, %v2343_v0  ;;  %v422_v26 = vld [vmem:[%s2897_s4 + $0x18] sm:$0xff]  ;;  %v421_v30 = vld [vmem:[%s2897_s4 + $0x10] sm:$0xff]  ;;  %v420_v32 = vld [vmem:[%s2897_s4 + $0x8] sm:$0xff] }
  0x1a   :  { %2174 = vmatpush3.msra.mxu1 %v174_v6  ;;  %2181 = vmatpush3.msra.mxu0 %v266_v8  ;;  %v2036_v9 = vld [vmem:[%s2895_s0] ss:$0 sm:$0xff]  ;;  %v506_v29 = vld [vmem:[%s2898_s11 + $0x18] sm:$0xff]  ;;  %v505_v31 = vld [vmem:[%s2898_s11 + $0x10] sm:$0xff]  ;;  %s2901_s0 = sld [smem:[#allocation12_spill]] }
  0x1b   :  { %2175 = vmatprep.subr.mxu1 %v2343_v0  ;;  %2182 = vmatprep.subr.mxu0 %v2343_v0  ;;  %v504_v33 = vld [vmem:[%s2898_s11 + $0x8] sm:$0xff]  ;;  %v419_v34 = vld [vmem:[%s2897_s4] sm:$0xff]  ;;  %v844_v2 = vld [vmem:[%s2860_s19 + $0x10] sm:$0xff] }
  0x1c   :  { %2176 = vmatpush3.msra.mxu1 %v173_v7  ;;  %2183 = vmatpush3.msra.mxu0 %v265_v18  ;;  %v2038_v21 = vld [vmem:[%s2896_s3] ss:$0 sm:$0xff]  ;;  %v843_v4 = vld [vmem:[%s2860_s19 + $0x8] sm:$0xff] }
  0x1d   :  { %2191 = vmatprep.subr.mxu1 %v2343_v0  ;;  %2184 = vmatprep.subr.mxu0 %v2343_v0  ;;  %v503_v35 = vld [vmem:[%s2898_s11] sm:$0xff]  ;;  %v927_v5 = vld [vmem:[%s2858_s21 + $0x8] sm:$0xff] }
  0x1e   :  { %2185 = vmatpush3.msra.mxu0 %v264_v19  ;;  %v2042_v36 = vld [vmem:[%s2899_s8] ss:$0 sm:$0xff]  ;;  %s2902_s8 = sld [smem:[#allocation13_spill]] }
  0x1f   :  { %2186 = vmatprep.subr.mxu0 %v2343_v0  ;;  %v588_v42 = vld [vmem:[%s2900_s30] sm:$0x7] }
  0x20   :  { %2187 = vmatpush3.msra.mxu0 %v263_v20  ;;  %v677_v43 = vld [vmem:[%s2901_s0 + $0x18] sm:$0xff]  ;;  %v676_v44 = vld [vmem:[%s2901_s0 + $0x10] sm:$0xff]  ;;  %v675_v45 = vld [vmem:[%s2901_s0 + $0x8] sm:$0xff] }
  0x21   :  { %2202 = vmatprep.subr.mxu0 %v2343_v0  ;;  %v674_v46 = vld [vmem:[%s2901_s0] sm:$0xff] }
  0x22   :  { %v842_v6 = vld [vmem:[%s2860_s19] sm:$0xff] }
  0x23   :  { %v926_v7 = vld [vmem:[%s2858_s21] sm:$0xff] }
  0x24   :  { %v2047_v51 = vld [vmem:[%s2902_s8] ss:$0 sm:$0xff] }
  0x25   :  { %v2045_v8 = vld [vmem:[%s2861_s12] ss:$0 sm:$0xff] }
  0x26   :  { %v1101_v19 = vld [vmem:[%s2865_s25] sm:$0xff] }
  0xd7   :  { %v168_v10 = vpop.f32.mrf.mxu0 }
  0xd8   :  { %v169_v11 = vadd.f32 %v2036_v9, %v168_v10 }
  0xd9   :  { %v2168_v12 = vpop.f32.mrf.mxu0 }
  0xda   :  { %v172_v13 = vmax.f32 %v169_v11, 0.0  ;;  %v2052_v11 = vld [vmem:[%s2862_s18] ss:$0 sm:$0xff] }
  0xdc   :  { %2178 = vmatmul.mubr.msk.f32.vlgmr.msra.gmra.mxu1 %vm184_vm2, %v172_v13 }
  0xdd   :  { %2192 = vmatpush3.msra.mxu1 %v262_v14  ;;  %2199 = vmatprep.mubr.msk.f32.mxu1 %vm2344_vm0, %v2343_v0  ;;  %v87_v14 = vld [vmem:[%s2863_s1] sm:$0xff] }
  0xde   :  { %2193 = vmatprep.subr.mxu1 %v2343_v0 }
  0xdf   :  { %2194 = vmatpush3.msra.mxu1 %v261_v15 }
  0xe0   :  { %2195 = vmatprep.subr.mxu1 %v2343_v0 }
  0xe1   :  { %2196 = vmatpush3.msra.mxu1 %v260_v16  ;;  %v2043_v16 = vld [vmem:[%s2864_s10] ss:$0 sm:$0xff] }
  0xe2   :  { %2197 = vmatprep.subr.mxu1 %v2343_v0 }
  0xe3   :  { %2198 = vmatpush3.msra.mxu1 %v259_v17 }
  0xe4   :  { %2200 = vmatmul.mubr.msk.f32.vlgmr.msra.gmra.mxu1 %vm184_vm2, %v172_v13  ;;  %2213 = vmatprep.subr.mxu1 %v2343_v0 }
  0xe5   :  { %2221 = vmatprep.mubr.msk.f32.mxu1 %vm2344_vm0, %v2343_v0  ;;  %2214 = vmatpush3.msra.mxu1 %v506_v29 }
  0xe6   :  { %2215 = vmatprep.subr.mxu1 %v2343_v0 }
  0xe7   :  { %2216 = vmatpush3.msra.mxu1 %v505_v31 }
  0xe8   :  { %2217 = vmatprep.subr.mxu1 %v2343_v0 }
  0xe9   :  { %2218 = vmatpush3.msra.mxu1 %v504_v33  ;;  %v1179_v33 = vlaneseq }
  0xea   :  { %2219 = vmatprep.subr.mxu1 %v2343_v0 }
  0xeb   :  { %2220 = vmatpush3.msra.mxu1 %v503_v35  ;;  %v2739_v35 = vand.u32 127, %v1179_v33 }
  0xec   :  { %2240 = vmatprep.subr.mxu1 %v2343_v0 }
 0x19c   :  { %v254_v22 = vpop.f32.mrf.mxu1 }
 0x19d   :  { %v255_v23 = vadd.f32 %v2038_v21, %v254_v22 }
 0x19e   :  { %v2179_v24 = vpop.f32.mrf.mxu1 }
 0x19f   :  { %v258_v25 = vmax.f32 %v255_v23, 0.0  ;;  %v1011_v23 = vld [vmem:[%s2866_s23] sm:$0xff] }
 0x1a0   :  { %v2056_v24 = vld [vmem:[%s2867_s22] ss:$0 sm:$0xff] }
 0x1a1   :  { %2189 = vmatmul.mubr.msk.f32.vlgmr.msra.gmra.mxu0 %vm184_vm2, %v258_v25 }
 0x1a2   :  { %2203 = vmatpush3.msra.mxu0 %v422_v26  ;;  %2210 = vmatprep.mubr.msk.f32.mxu0 %vm2344_vm0, %v2343_v0 }
 0x1a3   :  { %2204 = vmatprep.subr.mxu0 %v2343_v0 }
 0x1a4   :  { %v407_v27 = vpop.f32.mrf.mxu1  ;;  %2205 = vmatpush3.msra.mxu0 %v421_v30 }
 0x1a5   :  { %2206 = vmatprep.subr.mxu0 %v2343_v0 }
 0x1a6   :  { %v2201_v28 = vpop.f32.mrf.mxu1  ;;  %2207 = vmatpush3.msra.mxu0 %v420_v32 }
 0x1a7   :  { %2208 = vmatprep.subr.mxu0 %v2343_v0 }
 0x1a8   :  { %2209 = vmatpush3.msra.mxu0 %v419_v34  ;;  %v2737_v34 = vshrl.u32 %v1179_v33, 7 }
 0x1a9   :  { %2224 = vmatprep.subr.mxu0 %v2343_v0 }
 0x1aa   :  { %vm1183_vm7 = vcmp.eq.s32.totalorder %v2739_v35, %v2737_v34 }
 0x261   :  { %v337_v37 = vpop.f32.mrf.mxu0 }
 0x262   :  { %v408_v38 = vadd.f32 %v407_v27, %v337_v37  ;;  %v2054_v37 = vld [vmem:[%s2868_s20] ss:$0 sm:$0xff] }
 0x263   :  { %v2190_v39 = vpop.f32.mrf.mxu0 }
 0x264   :  { %v417_v40 = vadd.f32 %v2042_v36, %v408_v38  ;;  %v1185_v36 = vadd.s32 3, %v2737_v34  ;;  %v88_v38 = vld [vmem:[%s2869_s2] sm:$0xff] }
 0x266   :  { %v418_v41 = vmax.f32 %v417_v40, 0.0  ;;  %vm1186_vm6 = vcmp.eq.s32.totalorder %v2739_v35, %v1185_v36 }
 0x268   :  { %2211 = vmatmul.mubr.msk.f32.vlgmr.msra.gmra.mxu0 %vm184_vm2, %v418_v41  ;;  %2222 = vmatmul.mubr.msk.f32.vlgmr.msra.gmra.mxu1 %vm184_vm2, %v418_v41 }
 0x269   :  { %2225 = vmatpush3.msk.msra.mxu0 %vm599_vm3, %v588_v42  ;;  %2226 = vmatprep.mubr.msk.f32.mxu0 %vm2344_vm0, %v2343_v0 }
 0x26a   :  { %2229 = vmatprep.subr.mxu0 %v2343_v0  ;;  %2244 = vmatprep.mubr.msk.f32.mxu1 %vm2344_vm0, %v2343_v0 }
 0x26b   :  { %2241 = vmatpush3.msra.mxu1 %v760_v56  ;;  %v1575_v56 = vadd.s32 38, %v2737_v34 }
 0x26c   :  { %2227 = vmatmul.mubr.msk.f32.vlgmr.msra.gmra.mxu0 %vm596_vm4, %v2498_v3  ;;  %2242 = vmatprep.subr.mxu1 %v2343_v0  ;;  %v928_v3 = vld [vmem:[%s2858_s21 + $0x10] sm:$0xff] }
 0x26d   :  { %2237 = vmatprep.mubr.msk.f32.mxu0 %vm2344_vm0, %v2343_v0  ;;  %2230 = vmatpush3.msra.mxu0 %v677_v43  ;;  %v1187_v43 = vsel %vm1186_vm6, 1.0, %v2343_v0  ;;  %vm1576_vm12 = vcmp.eq.s32.totalorder %v2739_v35, %v1575_v56 }
 0x26e   :  { %2231 = vmatprep.subr.mxu0 %v2343_v0  ;;  %2243 = vmatpush3.msra.mxu1 %v759_v57  ;;  %v2345_v57 = vmov 1.0  }
 0x26f   :  { %2232 = vmatpush3.msra.mxu0 %v676_v44  ;;  %2247 = vmatprep.subr.mxu1 %v2343_v0  ;;  %v1184_v44 = vsel %vm1183_vm7, 1.0, %v2343_v0 }
 0x270   :  { %2233 = vmatprep.subr.mxu0 %v2343_v0 }
 0x271   :  { %2234 = vmatpush3.msra.mxu0 %v675_v45  ;;  %v1340_v45 = vadd.s32 8, %v2737_v34 }
 0x272   :  { %2235 = vmatprep.subr.mxu0 %v2343_v0 }
 0x273   :  { %2236 = vmatpush3.msra.mxu0 %v674_v46  ;;  %v1342_v46 = vadd.s32 6, %v1340_v45 }
 0x274   :  { %2258 = vmatprep.subr.mxu0 %v2343_v0 }
 0x275   :  { %vm1344_vm8 = vcmp.eq.s32.totalorder %v2739_v35, %v1342_v46 }
 0x328   :  { %v2638_v47 = vpop.f32.mrf.mxu0  ;;  %v580_v48 = vpop.f32.mrf.mxu1 }
 0x329   :  { %v2694_v9 = vadd.f32 %v2045_v8, %v580_v48  ;;  %v2713_v21 = vadd.f32 %v2043_v16, %v2638_v47  ;;  %v2058_v47 = vld [vmem:[%s2870_s24] ss:$0 sm:$0xff]  ;;  %v1341_v48 = vadd.s32 6, %v2737_v34 }
 0x32a   :  { %v2212_v49 = vpop.f32.mrf.mxu0  ;;  %v2223_v50 = vpop.f32.mrf.mxu1 }
 0x32b   :  { %v584_v10 = vmul.f32 1.442695, %v2694_v9  ;;  %v1421_v49 = vadd.s32 22, %v2737_v34  ;;  %vm1343_vm9 = vcmp.eq.s32.totalorder %v2739_v35, %v1341_v48 }
 0x32c   :  { %v669_v52 = vpop.f32.mrf.mxu0 }
 0x32d   :  { %v670_v53 = vadd.f32 %v2047_v51, %v669_v52  ;;  %2339 = vpow2.f32 %v584_v10  ;;  %v1498_v52 = vadd.s32 30, %v2737_v34  ;;  %vm1422_vm10 = vcmp.eq.s32.totalorder %v2739_v35, %v1421_v49 }
 0x32e   :  { %v2228_v54 = vpop.f32.mrf.mxu0 }
 0x32f   :  { %v673_v55 = vmax.f32 %v670_v53, 0.0  ;;  %v2061_v53 = vld [vmem:[%s2871_s26] ss:$0 sm:$0xff]  ;;  %vm1499_vm11 = vcmp.eq.s32.totalorder %v2739_v35, %v1498_v52 }
 0x331   :  { %2238 = vmatmul.mubr.msk.f32.vlgmr.msra.gmra.mxu0 %vm184_vm2, %v673_v55 }
 0x332   :  { %2266 = vmatprep.mubr.msk.f32.mxu0 %vm2344_vm0, %v2343_v0  ;;  %2259 = vmatpush3.msra.mxu0 %v929_v58 }
 0x333   :  { %2260 = vmatprep.subr.mxu0 %v2343_v0 }
 0x334   :  { %2261 = vmatpush3.msra.mxu0 %v928_v3 }
 0x335   :  { %2262 = vmatprep.subr.mxu0 %v2343_v0 }
 0x336   :  { %2263 = vmatpush3.msra.mxu0 %v927_v5 }
 0x337   :  { %2264 = vmatprep.subr.mxu0 %v2343_v0 }
 0x338   :  { %2265 = vmatpush3.msra.mxu0 %v926_v7 }
 0x339   :  { %2274 = vmatprep.subr.mxu0 %v2343_v0 }
 0x33a   :  { %v2700_v12 = vpop.eup %2339 }
 0x33b   :  { %v586_v20 = vmul.f32 %v2700_v12, %v87_v14 }
 0x33d   :  { %v2720_v22 = vadd.f32 %v586_v20, %v2713_v21 }
 0x3f1   :  { %v754_v60 = vpop.f32.mrf.mxu0 }
 0x3f2   :  { %v755_v61 = vadd.f32 %v2050_v59, %v754_v60  ;;  %v1652_v59 = vadd.s32 46, %v2737_v34  ;;  %v1726_v60 = vadd.s32 54, %v2737_v34 }
 0x3f3   :  { %v2239_v62 = vpop.f32.mrf.mxu0 }
 0x3f4   :  { %v758_v63 = vmax.f32 %v755_v61, 0.0  ;;  %vm1653_vm13 = vcmp.eq.s32.totalorder %v2739_v35, %v1652_v59  ;;  %v1803_v61 = vadd.s32 62, %v2737_v34  ;;  %vm1727_vm14 = vcmp.eq.s32.totalorder %v2739_v35, %v1726_v60 }
 0x3f5   :  { %v1880_v62 = vadd.s32 70, %v2737_v34 }
 0x3f6   :  { %2245 = vmatmul.mubr.msk.f32.vlgmr.msra.gmra.mxu1 %vm98_vm1, %v758_v63  ;;  %vm1804_vm15 = vcmp.eq.s32.totalorder %v2739_v35, %v1803_v61  ;;  %v1957_v63 = vadd.s32 78, %v2737_v34 }
 0x3f7   :  { %2248 = vmatpush3.msra.mxu1 %v845_v1  ;;  %2255 = vmatprep.mubr.msk.f32.mxu1 %vm2344_vm0, %v2343_v0 }
 0x3f8   :  { %2249 = vmatprep.subr.mxu1 %v2343_v0 }
 0x3f9   :  { %2250 = vmatpush3.msra.mxu1 %v844_v2 }
 0x3fa   :  { %2251 = vmatprep.subr.mxu1 %v2343_v0 }
 0x3fb   :  { %2252 = vmatpush3.msra.mxu1 %v843_v4 }
 0x3fc   :  { %2253 = vmatprep.subr.mxu1 %v2343_v0 }
 0x3fd   :  { %2254 = vmatpush3.msra.mxu1 %v842_v6 }
 0x3fe   :  { %2269 = vmatprep.subr.mxu1 %v1011_v23 }
 0x4b6   :  { %v837_v13 = vpop.f32.mrf.mxu1 }
 0x4b7   :  { %v838_v15 = vadd.f32 %v2052_v11, %v837_v13 }
 0x4b8   :  { %v2246_v17 = vpop.f32.mrf.mxu1 }
 0x4b9   :  { %v841_v18 = vmax.f32 %v838_v15, 0.0 }
 0x4bb   :  { %2256 = vmatmul.mubr.msk.f32.vlgmr.msra.gmra.mxu1 %vm184_vm2, %v841_v18  ;;  %2267 = vmatmul.mubr.msk.f32.vlgmr.msra.gmra.mxu0 %vm184_vm2, %v841_v18  ;;  %vm1958_vm2 = vcmp.eq.s32.totalorder %v2739_v35, %v1957_v63 }
 0x4bc   :  { %2275 = vmatpush3.msra.mxu0 %v1101_v19  ;;  %2276 = vmatprep.mubr.msk.f32.mxu0 %vm2344_vm0, %v2343_v0 }
 0x4bd   :  { %2284 = vmatprep.subr.mxu0 %v2343_v0  ;;  %2270 = vmatpush3.msra.mxu1 %v1011_v23 }
 0x4be   :  { %2279 = vmatprep.subr.mxu1 %v2343_v0 }
 0x4bf   :  { %2277 = vmatmul.mubr.msk.f32.vlgmr.msra.gmra.mxu0 %vm1019_vm5, %v2720_v22 }
 0x4c0   :  { %2286 = vmatprep.mubr.msk.f32.mxu0 %vm2344_vm0, %v2343_v0  ;;  %2285 = vmatpush3.msk.msra.mxu0 %vm599_vm3, %v1184_v44 }
 0x4c1   :  { %2296 = vmatprep.subr.mxu0 %v2343_v0 }
 0x57b   :  { %v922_v25 = vpop.f32.mrf.mxu1  ;;  %v1003_v26 = vpop.f32.mrf.mxu0 }
 0x57c   :  { %v2734_v27 = vadd.f32 %v2056_v24, %v1003_v26  ;;  %v2750_v40 = vadd.f32 %v2054_v37, %v922_v25 }
 0x57d   :  { %v2257_v28 = vpop.f32.mrf.mxu1  ;;  %v2268_v29 = vpop.f32.mrf.mxu0 }
 0x57e   :  { %v1007_v30 = vmul.f32 1.442695, %v2734_v27 }
 0x57f   :  { %v1175_v31 = vpop.f32.mrf.mxu0 }
 0x580   :  { %2341 = vpow2.f32 %v1007_v30  ;;  %v1176_v58 = vadd.f32 %v2061_v53, %v1175_v31 }
 0x581   :  { %v2278_v32 = vpop.f32.mrf.mxu0 }
 0x58d   :  { %v2748_v39 = vpop.eup %2341 }
 0x58e   :  { %v1009_v41 = vmul.f32 %v2748_v39, %v88_v38 }
 0x590   :  { %v2755_v42 = vadd.f32 %v1009_v41, %v2750_v40 }
 0x592   :  { %2271 = vmatprep.mubr.msk.f32.mxu1 %vm1019_vm5, %v2755_v42 }
 0x593   :  { %2272 = vmatmul.mubr.msk.f32.vlgmr.msra.gmra.mxu1 %vm1019_vm5, %v2720_v22 }
 0x594   :  { %2280 = vmatpush3.msk.msra.mxu1 %vm599_vm3, %v1187_v43  ;;  %2281 = vmatprep.mubr.msk.f32.mxu1 %vm2344_vm0, %v2343_v0 }
 0x595   :  { %2289 = vmatprep.subr.mxu1 %v2343_v0 }
 0x653   :  { %v2273_v50 = vpop.f32.mrf.mxu1 }
 0x654   :  { %v1098_v51 = vadd.f32 %v2273_v50, %v2058_v47 }
 0x655   :  { %v1092_v54 = vpop.f32.mrf.mxu1 }
 0x656   :  { %v1093_v55 = vadd.f32 %v2058_v47, %v1092_v54  ;;  %2282 = vmatmul.mubr.msk.f32.vlgmr.msra.gmra.mxu1 %vm596_vm4, %v1098_v51 }
 0x657   :  { %2290 = vmatpush3.msk.msra.mxu1 %vm1344_vm8, %v2345_v57  ;;  %2293 = vmatprep.mubr.msk.f32.mxu1 %vm2344_vm0, %v2343_v0 }
 0x658   :  { %2291 = vmatprep.subr.mxu1 %v2343_v0  ;;  %2287 = vmatmul.mubr.msk.f32.vlgmr.msra.gmra.mxu0 %vm596_vm4, %v1093_v55 }
 0x659   :  { %2292 = vmatpush3.msk.msra.mxu1 %vm1343_vm9, %v2345_v57  ;;  %2297 = vmatpush3.msk.msra.mxu0 %vm1422_vm10, %v2345_v57 }
 0x65a   :  { %2301 = vmatprep.subr.mxu1 %v2343_v0  ;;  %2294 = vmatmul.mubr.msk.f32.vlgmr.msra.gmra.mxu1 %vm98_vm1, %v1176_v58  ;;  %vm1881_vm1 = vcmp.eq.s32.totalorder %v2739_v35, %v1880_v62 }
 0x65b   :  { %2302 = vmatpush3.msk.msra.mxu1 %vm1499_vm11, %v2345_v57  ;;  %2298 = vmatprep.mubr.msk.f32.mxu0 %vm2344_vm0, %v2343_v0 }
 0x65c   :  { %2306 = vmatprep.subr.mxu0 %v2343_v0  ;;  %2299 = vmatmul.mubr.msk.f32.vlgmr.msra.gmra.mxu0 %vm1019_vm5, %v2713_v21 }
 0x65d   :  { %2307 = vmatpush3.msk.msra.mxu0 %vm1576_vm12, %v2345_v57  ;;  %2303 = vmatprep.mubr.msk.f32.mxu1 %vm2344_vm0, %v2343_v0 }
 0x65e   :  { %2311 = vmatprep.subr.mxu1 %v2343_v0  ;;  %2304 = vmatmul.mubr.msk.f32.vlgmr.msra.gmra.mxu1 %vm1019_vm5, %v2694_v9 }
 0x65f   :  { %2312 = vmatpush3.msk.msra.mxu1 %vm1653_vm13, %v2345_v57  ;;  %2308 = vmatprep.mubr.msk.f32.mxu0 %vm2344_vm0, %v2343_v0 }
 0x660   :  { %2316 = vmatprep.subr.mxu0 %v2343_v0  ;;  %2309 = vmatmul.mubr.msk.f32.vlgmr.msra.gmra.mxu0 %vm1019_vm5, %v2700_v12 }
 0x661   :  { %2317 = vmatpush3.msk.msra.mxu0 %vm1727_vm14, %v2345_v57  ;;  %2313 = vmatprep.mubr.msk.f32.mxu1 %vm2344_vm0, %v2343_v0 }
 0x662   :  { %2321 = vmatprep.subr.mxu1 %v2343_v0  ;;  %2314 = vmatmul.mubr.msk.f32.vlgmr.msra.gmra.mxu1 %vm1019_vm5, %v2720_v22 }
 0x663   :  { %2322 = vmatpush3.msk.msra.mxu1 %vm1804_vm15, %v2345_v57  ;;  %2318 = vmatprep.mubr.msk.f32.mxu0 %vm2344_vm0, %v2343_v0 }
 0x664   :  { %2326 = vmatprep.subr.mxu0 %v2343_v0  ;;  %2319 = vmatmul.mubr.msk.f32.vlgmr.msra.gmra.mxu0 %vm1019_vm5, %v2750_v40 }
 0x665   :  { %2327 = vmatpush3.msk.msra.mxu0 %vm1881_vm1, %v2345_v57  ;;  %2323 = vmatprep.mubr.msk.f32.mxu1 %vm2344_vm0, %v2343_v0 }
 0x666   :  { %2331 = vmatprep.subr.mxu1 %v2343_v0  ;;  %2324 = vmatmul.mubr.msk.f32.vlgmr.msra.gmra.mxu1 %vm1019_vm5, %v2734_v27 }
 0x667   :  { %2332 = vmatpush3.msk.msra.mxu1 %vm1958_vm2, %v2345_v57  ;;  %2328 = vmatprep.mubr.msk.f32.mxu0 %vm2344_vm0, %v2343_v0 }
 0x668   :  { %2329 = vmatmul.mubr.msk.f32.vlgmr.msra.gmra.mxu0 %vm1019_vm5, %v2748_v39  ;;  %2333 = vmatprep.mubr.msk.f32.mxu1 %vm2344_vm0, %v2343_v0 }
 0x66a   :  { %2334 = vmatmul.mubr.msk.f32.vlgmr.msra.gmra.mxu1 %vm1019_vm5, %v2755_v42 }
 0x716   :  { %v1260_v1 = vpop.f32.mrf.mxu1 }
 0x718   :  { %v2283_v2 = vpop.f32.mrf.mxu1  ;;  %v1336_v3 = vpop.f32.mrf.mxu0 }
 0x719   :  { %v1337_v4 = vadd.f32 %v1336_v3, %v1260_v1 }
 0x71a   :  { %v2288_v5 = vpop.f32.mrf.mxu0  ;;  %v1416_v6 = vpop.f32.mrf.mxu1 }
 0x71b   :  { %v1420_v7 = vadd.f32 %v1416_v6, %v1337_v4 }
 0x71c   :  { %v2295_v8 = vpop.f32.mrf.mxu1  ;;  %v1493_v9 = vpop.f32.mrf.mxu0 }
 0x71d   :  { %v1497_v10 = vadd.f32 %v1493_v9, %v1420_v7 }
 0x71e   :  { %v2300_v11 = vpop.f32.mrf.mxu0  ;;  %v1570_v12 = vpop.f32.mrf.mxu1 }
 0x71f   :  { %v1574_v13 = vadd.f32 %v1570_v12, %v1497_v10 }
 0x720   :  { %v2305_v14 = vpop.f32.mrf.mxu1  ;;  %v1647_v15 = vpop.f32.mrf.mxu0 }
 0x721   :  { %v1651_v16 = vadd.f32 %v1647_v15, %v1574_v13 }
 0x722   :  { %v2310_v0 = vpop.f32.mrf.mxu0  ;;  %v1721_v17 = vpop.f32.mrf.mxu1 }
 0x723   :  { %v1725_v18 = vadd.f32 %v1721_v17, %v1651_v16 }
 0x724   :  { %v2315_v19 = vpop.f32.mrf.mxu1  ;;  %v1798_v20 = vpop.f32.mrf.mxu0 }
 0x725   :  { %v1802_v21 = vadd.f32 %v1798_v20, %v1725_v18 }
 0x726   :  { %v2320_v22 = vpop.f32.mrf.mxu0  ;;  %v1875_v23 = vpop.f32.mrf.mxu1 }
 0x727   :  { %v1879_v24 = vadd.f32 %v1875_v23, %v1802_v21 }
 0x728   :  { %v2325_v25 = vpop.f32.mrf.mxu1  ;;  %v1952_v26 = vpop.f32.mrf.mxu0 }
 0x729   :  { %v1956_v27 = vadd.f32 %v1952_v26, %v1879_v24 }
 0x72a   :  { %v2330_v28 = vpop.f32.mrf.mxu0  ;;  %v2026_v29 = vpop.f32.mrf.mxu1 }
 0x72b   :  { %v2030_v30 = vadd.f32 %v2026_v29, %v1956_v27 }
 0x72c   :  { %v2335_v31 = vpop.f32.mrf.mxu1 }
 0x72d   :  { %2031 = vst [vmem:[%s2872_s27] sm:$0xff] %v2030_v30 }

</bundles_post_ra>
